<compile_context>
chip_gen: v7x
topology: tpu7x:2x2x1
jax: 0.10.0
libtpu: 0.0.40
codegen_flags: <defaults>
</compile_context>

<pallas_src>
import inspect

import jax
import jax.numpy as jnp
from jax.experimental import pallas as pl
from jax.experimental.pallas import tpu as pltpu

BN_EPS = 1e-5


def _round_up(x, m):
    return (x + m - 1) // m * m


def _vmem_capacity_bytes():
    try:
        return int(getattr(pltpu.get_tpu_info(), "vmem_capacity_bytes", 64 * 2**20))
    except Exception:
        return 64 * 2**20


def _single_buf_kwargs():
    # Single-buffer small weight/bias operands (saves VMEM, per perf review); guard the API.
    try:
        if hasattr(pl, "Buffered") and "pipeline_mode" in inspect.signature(pl.BlockSpec).parameters:
            return {"pipeline_mode": pl.Buffered(1)}
    except Exception:
        pass
    return {}


_SINGLE_BUF = _single_buf_kwargs()


# ----------------------------------------------------------------------------------------------
# Kernels
# ----------------------------------------------------------------------------------------------
def _sepconv_down_mxu_kernel(std_ref, w_ref, b_ref, o_ref):
    """Single-matmul path: out = [win(0,0)|win(0,1)|win(1,0)|win(1,1)] @ W + b.

    std_ref : [1, Ho+1, Wop+1, 4*Cin]  2x2 space-to-depth image (parity planes on lane axis)
    w_ref   : [16*Cin, TN]             folded (depthwise * pointwise * BN) weights
    b_ref   : [1, TN]                  folded bias (f32)
    o_ref   : [1, Ho*Wop, TN]
    """
    _, hp, wp, c4 = std_ref.shape
    ho, wo = hp - 1, wp - 1
    slab = jnp.concatenate(
        [std_ref[0, dh:dh + ho, dw:dw + wo, :] for dh in (0, 1) for dw in (0, 1)],
        axis=-1).reshape(ho * wo, 4 * c4)
    out = jnp.dot(slab, w_ref[...], preferred_element_type=jnp.float32) + b_ref[...]
    o_ref[0] = out.astype(o_ref.dtype)


def _sepconv_down_vpu_kernel(std_ref, dww_ref, pww_ref, b_ref, o_ref):
    """Wide-Cin path: VPU depthwise (f32) + one pointwise matmul.

    std_ref : [1, Ho+1, Wop+1, 4*Cin]
    dww_ref : [4, 1, 4*Cin]   per-(dh,dw)-window depthwise weights on the space-to-depth channels
    pww_ref : [Cin, TN]       pointwise weights with BN scale folded in
    b_ref   : [1, TN]         folded bias (includes depthwise-bias contribution)
    o_ref   : [1, Ho*Wop, TN]
    """
    _, hp, wp, c4 = std_ref.shape
    ho, wo = hp - 1, wp - 1
    cin = c4 // 4
    acc = jnp.zeros((ho, wo, c4), jnp.float32)
    for dh in (0, 1):
        for dw in (0, 1):
            win = std_ref[0, dh:dh + ho, dw:dw + wo, :].astype(jnp.float32)
            acc = acc + win * dww_ref[2 * dh + dw]
    d = (acc[..., 0 * cin:1 * cin] + acc[..., 1 * cin:2 * cin]
         + acc[..., 2 * cin:3 * cin] + acc[..., 3 * cin:4 * cin])
    d2 = d.reshape(ho * wo, cin).astype(pww_ref.dtype)
    out = jnp.dot(d2, pww_ref[...], preferred_element_type=jnp.float32) + b_ref[...]
    o_ref[0] = out.astype(o_ref.dtype)


# ----------------------------------------------------------------------------------------------
# Wrapper
# ----------------------------------------------------------------------------------------------
def conv_downsample_nhwc(x_nhwc, params, *, kernel_size=3, stride=2, padding=1,
                         use_bf16=True, fold_dw_into_mxu=None, cout_tile=128,
                         mxu_k_depth=256):
    """NHWC-native Pallas forward of the BiFPN separable-conv downsample. x: [N, H, W, Cin]."""
    assert kernel_size == 3 and stride == 2 and padding == 1, "kernel supports k=3, s=2, p=1"
    N, H, W, Cin = x_nhwc.shape
    Cout = params["pw_w"].shape[0]
    Ho = (H + 2 * padding - kernel_size) // stride + 1
    Wo = (W + 2 * padding - kernel_size) // stride + 1
    Wop = _round_up(Wo, 8)            # sublane-aligned -> layout-free (Ho,Wop)->(Ho*Wop) reshape
    P = Ho * Wop
    Cpad = _round_up(Cout, 128)       # lane-dense output stores
    TN = min(cout_tile, Cpad)
    assert Cpad % TN == 0
    NJ = Cpad // TN
    if fold_dw_into_mxu is None:
        # Fold the depthwise into the MXU while each window's contraction (4*Cin) fits one
        # systolic pass (256-deep on v6e/v7x; pass mxu_k_depth=128 on v5e).
        fold_dw_into_mxu = (4 * Cin) <= mxu_k_depth

    cdt = jnp.bfloat16 if use_bf16 else jnp.float32
    esz = 2 if use_bf16 else 4

    # ---- layout: cast (bf16), zero-pad, 2x2 space-to-depth (parity planes on the lane axis) ----
    x = x_nhwc.astype(cdt)
    Hp, Wp = 2 * (Ho + 1), 2 * (Wop + 1)
    xp = jnp.pad(x, ((0, 0), (padding, Hp - H - padding),
                     (padding, Wp - W - padding), (0, 0)))
    std = (xp.reshape(N, Ho + 1, 2, Wop + 1, 2, Cin)
             .transpose(0, 1, 3, 2, 4, 5)
             .reshape(N, Ho + 1, Wop + 1, 4 * Cin))               # [N, Ho+1, Wop+1, 4*Cin]

    # ---- parameter folding: inference BatchNorm folded into pointwise weights / bias ----
    dw_w = params["dw_w"].reshape(Cin, kernel_size, kernel_size).astype(jnp.float32)
    dw_b = params["dw_b"].reshape(Cin).astype(jnp.float32)
    pw = params["pw_w"].reshape(Cout, Cin).astype(jnp.float32)
    pw_b = params["pw_b"].reshape(Cout).astype(jnp.float32)
    scale = params["bn_gamma"] * jax.lax.rsqrt(params["bn_var"] + BN_EPS)    # [Cout]
    pw_s = pw.T * scale[None, :]                                             # [Cin, Cout]
    bias = (pw @ dw_b + pw_b - params["bn_mean"]) * scale + params["bn_beta"]

    def pad_cout(a):
        return jnp.pad(a, [(0, 0)] * (a.ndim - 1) + [(0, Cpad - Cout)])

    bias_p = pad_cout(bias[None, :]).astype(jnp.float32)                     # [1, Cpad]

    std_spec = pl.BlockSpec((1, Ho + 1, Wop + 1, 4 * Cin), lambda b, j: (b, 0, 0, 0))
    out_spec = pl.BlockSpec((1, P, TN), lambda b, j: (b, 0, j))
    out_shape = jax.ShapeDtypeStruct((N, P, Cpad), jnp.float32)

    vmem_limit = int(0.85 * _vmem_capacity_bytes())    # leave 10-20% headroom for Mosaic scratch
    std_blk = (Ho + 1) * (Wop + 1) * 4 * Cin * esz
    out_blk = P * TN * 4
    cparams = pltpu.CompilerParams(dimension_semantics=("parallel", "parallel"),
                                   vmem_limit_bytes=vmem_limit)

    def _check_vmem(need):
        if need > vmem_limit:
            # TODO(synk): H-chunked grid with a 1-row halo for feature maps this large.
            raise ValueError(
                f"per-image block (~{need >> 20} MiB) exceeds the VMEM budget "
                f"({vmem_limit >> 20} MiB); H-chunked tiling not implemented yet")

    if fold_dw_into_mxu:
        # W[dh, dw, p*Cin+c, co] = dw_w[c, kh, kw] * pw_w[co, c] * bn_scale[co], zero for taps
        # falling outside the 3x3 window; bias collects dw/pw bias + BN shift.
        w2 = jnp.zeros((2, 2, 4 * Cin, Cout), jnp.float32)
        for kh in range(3):
            for kw in range(3):
                dh, dwn, p = kh // 2, kw // 2, 2 * (kh % 2) + (kw % 2)
                w2 = w2.at[dh, dwn, p * Cin:(p + 1) * Cin, :].set(
                    dw_w[:, kh, kw][:, None] * pw_s)
        w16 = pad_cout(w2).reshape(16 * Cin, Cpad).astype(cdt)               # [16*Cin, Cpad]

        need = (2 * std_blk + 2 * out_blk + 16 * Cin * TN * esz + TN * 4
                + P * 16 * Cin * esz + P * TN * 4 + (4 << 20))
        _check_vmem(need)
        flops = 2 * N * P * 16 * Cin * Cpad
        bytes_acc = std.size * esz + w16.size * esz + bias_p.size * 4 + N * P * Cpad * 4

        out2d = pl.pallas_call(
            _sepconv_down_mxu_kernel,
            out_shape=out_shape,
            grid=(N, NJ),
            in_specs=[std_spec,
                      pl.BlockSpec((16 * Cin, TN), lambda b, j: (0, j), **_SINGLE_BUF),
                      pl.BlockSpec((1, TN), lambda b, j: (0, j), **_SINGLE_BUF)],
            out_specs=out_spec,
            compiler_params=cparams,
            cost_estimate=pl.CostEstimate(flops=int(flops), transcendentals=0,
                                          bytes_accessed=int(bytes_acc)),
        )(std, w16, bias_p)
    else:
        dww4 = jnp.zeros((4, 1, 4 * Cin), jnp.float32)
        for kh in range(3):
            for kw in range(3):
                dh, dwn, p = kh // 2, kw // 2, 2 * (kh % 2) + (kw % 2)
                dww4 = dww4.at[2 * dh + dwn, 0, p * Cin:(p + 1) * Cin].set(dw_w[:, kh, kw])
        pww_p = pad_cout(pw_s).astype(cdt)                                   # [Cin, Cpad]

        need = (2 * std_blk + 2 * out_blk + 16 * Cin * 4 + Cin * TN * esz + TN * 4
                + P * 4 * Cin * 4 + P * Cin * 4 + P * TN * 4 + (4 << 20))
        _check_vmem(need)
        flops = 2 * N * P * 16 * Cin + 2 * N * P * Cin * Cpad
        bytes_acc = std.size * esz + dww4.size * 4 + pww_p.size * esz + bias_p.size * 4 \
            + N * P * Cpad * 4

        out2d = pl.pallas_call(
            _sepconv_down_vpu_kernel,
            out_shape=out_shape,
            grid=(N, NJ),
            in_specs=[std_spec,
                      pl.BlockSpec((4, 1, 4 * Cin), lambda b, j: (0, 0, 0), **_SINGLE_BUF),
                      pl.BlockSpec((Cin, TN), lambda b, j: (0, j), **_SINGLE_BUF),
                      pl.BlockSpec((1, TN), lambda b, j: (0, j), **_SINGLE_BUF)],
            out_specs=out_spec,
            compiler_params=cparams,
            cost_estimate=pl.CostEstimate(flops=int(flops), transcendentals=0,
                                          bytes_accessed=int(bytes_acc)),
        )(std, dww4, pww_p, bias_p)

    return out2d.reshape(N, Ho, Wop, Cpad)[:, :, :Wo, :Cout]                 # NHWC


def conv_downsample(x_nchw, params, **kwargs):
    """NCHW adapter (for parity with the PyTorch module / reference).  For end-to-end BiFPN use,
    prefer conv_downsample_nhwc and keep activations NHWC (drops two full HBM transpose passes)."""
    y = conv_downsample_nhwc(jnp.transpose(x_nchw, (0, 2, 3, 1)), params, **kwargs)
    return jnp.transpose(y, (0, 3, 1, 2))


# ----------------------------------------------------------------------------------------------
# Pure-JAX reference + test
# ----------------------------------------------------------------------------------------------
def _reference(x_nchw, params, *, padding=1, stride=2):
    Cin = x_nchw.shape[1]
    dw = jax.lax.conv_general_dilated(
        x_nchw, params["dw_w"], window_strides=(stride, stride),
        padding=((padding, padding), (padding, padding)),
        feature_group_count=Cin, dimension_numbers=("NCHW", "OIHW", "NCHW"),
        precision=jax.lax.Precision.HIGHEST)
    dw = dw + params["dw_b"].reshape(1, -1, 1, 1)
    pw = jax.lax.conv_general_dilated(
        dw, params["pw_w"], window_strides=(1, 1), padding="VALID",
        dimension_numbers=("NCHW", "OIHW", "NCHW"),
        precision=jax.lax.Precision.HIGHEST)
    pw = pw + params["pw_b"].reshape(1, -1, 1, 1)
    scale = (params["bn_gamma"] / jnp.sqrt(params["bn_var"] + BN_EPS)).reshape(1, -1, 1, 1)
    return (pw - params["bn_mean"].reshape(1, -1, 1, 1)) * scale \
        + params["bn_beta"].reshape(1, -1, 1, 1)


def _init_params(key, in_channel, out_channel, kernel_size=3):
    k = jax.random.split(key, 8)
    return {
        "dw_w": 0.1 * jax.random.normal(k[0], (in_channel, 1, kernel_size, kernel_size), jnp.float32),
        "dw_b": 0.1 * jax.random.normal(k[1], (in_channel,), jnp.float32),
        "pw_w": 0.1 * jax.random.normal(k[2], (out_channel, in_channel, 1, 1), jnp.float32),
        "pw_b": 0.1 * jax.random.normal(k[3], (out_channel,), jnp.float32),
        "bn_gamma": 1.0 + 0.1 * jax.random.normal(k[4], (out_channel,), jnp.float32),
        "bn_beta": 0.1 * jax.random.normal(k[5], (out_channel,), jnp.float32),
        "bn_mean": 0.05 * jax.random.normal(k[6], (out_channel,), jnp.float32),
        "bn_var": 1.0 + 0.1 * jax.nn.softplus(jax.random.normal(k[7], (out_channel,), jnp.float32)),
    }


if __name__ == "__main__":
    key = jax.random.PRNGKey(0)
    k_x, k_p, k_x2, k_p2 = jax.random.split(key, 4)

    # Primary toy shape: N=2, Cin=4, Cout=8, 16x16 spatial.
    N, Cin, Cout, H, W = 2, 4, 8, 16, 16
    x = jax.random.normal(k_x, (N, Cin, H, W), jnp.float32)
    params = _init_params(k_p, Cin, Cout)
    ref = jax.block_until_ready(_reference(x, params))

    # MXU-folded single-matmul path, bf16 operands (f32 accumulate/output).
    # Tolerance deliberately relaxed to cover bf16 operand quantization (~2^-8 relative).
    out = jax.block_until_ready(conv_downsample(x, params))
    assert out.shape == (N, Cout, H // 2, W // 2), out.shape
    assert jnp.allclose(out, ref, atol=3e-2, rtol=3e-2), float(jnp.max(jnp.abs(out - ref)))

    # VPU-depthwise + single pointwise matmul path (wide-Cin fallback), exercised for coverage.
    out2 = jax.block_until_ready(conv_downsample(x, params, fold_dw_into_mxu=False))
    assert jnp.allclose(out2, ref, atol=3e-2, rtol=3e-2), float(jnp.max(jnp.abs(out2 - ref)))

    # f32 operands + odd spatial size (exercises asymmetric padding and Wo->Wop padding math).
    n2, cin2, cout2, h2, w2 = 1, 8, 8, 13, 13
    x2 = jax.random.normal(k_x2, (n2, cin2, h2, w2), jnp.float32)
    params2 = _init_params(k_p2, cin2, cout2)
    ref2 = jax.block_until_ready(_reference(x2, params2))
    out3 = jax.block_until_ready(conv_downsample(x2, params2, use_bf16=False))
    assert out3.shape == ref2.shape, out3.shape
    assert jnp.allclose(out3, ref2, atol=2e-3, rtol=2e-3), float(jnp.max(jnp.abs(out3 - ref2)))

    print("KERNEL_OK")
</pallas_src>

<mosaic_0001>
module attributes {stable_mosaic.version = 11 : i64} {
  func.func @_sepconv_down_mxu_kernel(%arg0: i32, %arg1: i32, %arg2: memref<1x9x9x16xbf16, #tpu.memory_space<vmem>>, %arg3: memref<64x128xbf16, #tpu.memory_space<vmem>>, %arg4: memref<1x128xf32, #tpu.memory_space<vmem>>, %arg5: memref<1x64x128xf32, #tpu.memory_space<vmem>>) attributes {dimension_semantics = [#tpu.dimension_semantics<parallel>, #tpu.dimension_semantics<parallel>], iteration_bounds = array<i64: 2, 1>, scalar_prefetch = 0 : i64, scratch_operands = 0 : i64, tpu.core_type = #tpu.core_type<tc>, window_params = [{transform_indices = @transform_0, window_bounds = array<i64: 1, 9, 9, 16>}, {pipeline_mode = #tpu.pipeline_mode<synchronous>, transform_indices = @transform_1, window_bounds = array<i64: 64, 128>}, {pipeline_mode = #tpu.pipeline_mode<synchronous>, transform_indices = @transform_2, window_bounds = array<i64: 1, 128>}, {transform_indices = @transform_3, window_bounds = array<i64: 1, 64, 128>}]} {
    %c0 = arith.constant 0 : index
    %c0_0 = arith.constant 0 : index
    %c0_1 = arith.constant 0 : index
    %c0_2 = arith.constant 0 : index
    %0 = vector.load %arg2[%c0, %c0_0, %c0_1, %c0_2] : memref<1x9x9x16xbf16, #tpu.memory_space<vmem>>, vector<1x8x8x16xbf16>
    %1 = vector.shape_cast %0 : vector<1x8x8x16xbf16> to vector<8x8x16xbf16>
    %c0_3 = arith.constant 0 : index
    %c0_4 = arith.constant 0 : index
    %c1 = arith.constant 1 : index
    %c0_5 = arith.constant 0 : index
    %2 = vector.load %arg2[%c0_3, %c0_4, %c1, %c0_5] : memref<1x9x9x16xbf16, #tpu.memory_space<vmem>>, vector<1x8x8x16xbf16>
    %3 = vector.shape_cast %2 : vector<1x8x8x16xbf16> to vector<8x8x16xbf16>
    %c0_6 = arith.constant 0 : index
    %c1_7 = arith.constant 1 : index
    %c0_8 = arith.constant 0 : index
    %c0_9 = arith.constant 0 : index
    %4 = vector.load %arg2[%c0_6, %c1_7, %c0_8, %c0_9] : memref<1x9x9x16xbf16, #tpu.memory_space<vmem>>, vector<1x8x8x16xbf16>
    %5 = vector.shape_cast %4 : vector<1x8x8x16xbf16> to vector<8x8x16xbf16>
    %c0_10 = arith.constant 0 : index
    %c1_11 = arith.constant 1 : index
    %c1_12 = arith.constant 1 : index
    %c0_13 = arith.constant 0 : index
    %6 = vector.load %arg2[%c0_10, %c1_11, %c1_12, %c0_13] : memref<1x9x9x16xbf16, #tpu.memory_space<vmem>>, vector<1x8x8x16xbf16>
    %7 = vector.shape_cast %6 : vector<1x8x8x16xbf16> to vector<8x8x16xbf16>
    %8 = tpu.concatenate %1, %3, %5, %7 in 2 : vector<8x8x16xbf16>, vector<8x8x16xbf16>, vector<8x8x16xbf16>, vector<8x8x16xbf16> -> vector<8x8x64xbf16>
    %9 = vector.shape_cast %8 : vector<8x8x64xbf16> to vector<64x64xbf16>
    %c0_14 = arith.constant 0 : index
    %c0_15 = arith.constant 0 : index
    %10 = vector.load %arg3[%c0_14, %c0_15] : memref<64x128xbf16, #tpu.memory_space<vmem>>, vector<64x128xbf16>
    %cst = arith.constant dense<0.000000e+00> : vector<64x128xf32>
    %11 = tpu.matmul %9, %10, %cst {dimension_numbers = #tpu.dot_dimension_numbers<[1], [0], [0], [1], [0, 0, 1, 1], [], []>} : vector<64x64xbf16>, vector<64x128xbf16>, vector<64x128xf32> -> vector<64x128xf32>
    %c0_16 = arith.constant 0 : index
    %c0_17 = arith.constant 0 : index
    %12 = vector.load %arg4[%c0_16, %c0_17] : memref<1x128xf32, #tpu.memory_space<vmem>>, vector<1x128xf32>
    %13 = vector.broadcast %12 : vector<1x128xf32> to vector<64x128xf32>
    %14 = arith.addf %11, %13 : vector<64x128xf32>
    %c0_18 = arith.constant 0 : index
    %c0_19 = arith.constant 0 : index
    %c0_20 = arith.constant 0 : index
    %15 = vector.load %arg5[%c0_18, %c0_19, %c0_20] : memref<1x64x128xf32, #tpu.memory_space<vmem>>, vector<1x64x128xf32>
    %16 = vector.shape_cast %15 : vector<1x64x128xf32> to vector<64x128xf32>
    %17 = vector.shape_cast %14 : vector<64x128xf32> to vector<1x64x128xf32>
    tpu.vector_store %arg5[%c0_18, %c0_19, %c0_20], %17 {strides = array<i32>} : memref<1x64x128xf32, #tpu.memory_space<vmem>>, vector<1x64x128xf32>,
    return
  }
  func.func @transform_0(%arg0: i32, %arg1: i32) -> (i32, i32, i32, i32) {
    %c0_i32 = arith.constant 0 : i32
    %c0_i32_0 = arith.constant 0 : i32
    %c0_i32_1 = arith.constant 0 : i32
    %c0_i32_2 = arith.constant 0 : i32
    return %arg0, %c0_i32, %c0_i32_0, %c0_i32_1 : i32, i32, i32, i32
  }
  func.func @transform_1(%arg0: i32, %arg1: i32) -> (i32, i32) {
    %c0_i32 = arith.constant 0 : i32
    %c0_i32_0 = arith.constant 0 : i32
    return %c0_i32, %arg1 : i32, i32
  }
  func.func @transform_2(%arg0: i32, %arg1: i32) -> (i32, i32) {
    %c0_i32 = arith.constant 0 : i32
    %c0_i32_0 = arith.constant 0 : i32
    return %c0_i32, %arg1 : i32, i32
  }
  func.func @transform_3(%arg0: i32, %arg1: i32) -> (i32, i32, i32) {
    %c0_i32 = arith.constant 0 : i32
    %c0_i32_0 = arith.constant 0 : i32
    return %arg0, %c0_i32, %arg1 : i32, i32, i32
  }
}

</mosaic_0001>

<bundles_post_ra>
// kernel: tpu_custom_call.1
= control target key start
LH: loop header
LB: loop body
LE: loop exit
PB: predicated region body
PF: predicated region fallthrough
CT: control target
= control target key end

     0   :  { %8 = vsyncpa [#allocation3], 0  ;;  %s1363_s0 = inlined_call_operand.vmem [shape: bf16[2,9,9,16], index: 0, kind: input, shape index: {}]   ;;  %s1364_s1 = inlined_call_operand.vmem [shape: bf16[64,128], index: 1, kind: input, shape index: {}]   ;;  %s1365_s2 = inlined_call_operand.vmem [shape: f32[1,128], index: 2, kind: input, shape index: {}]   ;;  %s1366_s3 = inlined_call_operand.hbm [shape: f32[2,64,128], index: 3, kind: output, shape index: {}]  }
   0x1   :  { %10 = vsyncpa [#allocation3 + $0x1], 0  ;;  %s1109_s12 = smov 0   ;;  %s1111_s13 = smov 0  }
   0x2   :  { %s1113_s14 = smov 0   ;;  %s1115_s15 = smov 0  }
   0x3   :  { %s1117_s16 = smov 0   ;;  %s1119_s17 = smov 0  }
   0x4 LB: > { %s814_s18 = sadd.s32 4294967295, %s1081_s17   ;;  %s815_s19 = sadd.s32 4294967294, %s1081_s17   ;;  %s1081_s17 = sphi %s1119_s17, %s16_s17   ;;  %s1077_s16 = sphi %s1117_s16, %s1373_s16   ;;  %s1073_s15 = sphi %s1115_s15, %s1372_s15   ;;  %s1069_s14 = sphi %s1113_s14, %s1371_s14   ;;  %s1065_s13 = sphi %s1111_s13, %s1370_s13   ;;  %s1061_s12 = sphi %s1109_s12, %s1369_s12  }
   0x5   : > { %s28_s20 = sadd.s32 1, %s1077_s16  ;;  %s115_s21 = sadd.s32 1, %s1069_s14 }
   0x6   : > { %p30_p0 = scmp.ge.s32.totalorder %s28_s20, 2  ;;  %p125_p1 = scmp.ne.s32.totalorder %s1069_s14, %s1065_s13 }
   0x7   : > { %p126_p2 = scmp.eq.s32.totalorder %s814_s18, 1  ;;  %p131_p3 = scmp.ne.s32.totalorder %s1065_s13, %s1061_s12 }
   0x8   : > { %s1375_s20 = smov (%p30_p0, %s28_s20), 0  ;;  %p132_p5 = scmp.eq.s32.totalorder %s815_s19, 1 }
   0x9   : > { %p1149_p4 = por %p126_p2, %p125_p1  ;;  %s110_s23 = ssub.s32 %s1077_s16, %s1375_s20 }
   0xa   : > { %p820_p6 = scmp.ge.s32.totalorder %s1081_s17, 1  ;;  %p113_p7 = scmp.eq.s32.totalorder %s110_s23, 0 }
   0xb   : > { %p1156_p8 = por %p132_p5, %p131_p3  ;;  %p171_p9 = scmp.lt.s32.totalorder %s1081_s17, 3 }
   0xc   : > { %s1162_s25 = scalar_select %p113_p7, %s1069_s14, %s115_s21  }
   0xd   : > { %p172_p10 = pnand %p820_p6, %p171_p9 }
   0xe   : > { %p202_p11 = scmp.lt.s32.totalorder (!%p172_p10), %s1073_s15, 1  ;;  %s1083_s4 = smov (!%p172_p10), 32   ;;  %v999_v60 = vld [vmem:[%s1364_s1] sm:$0xff] (!%p172_p10)   ;;  %vm496_vm0 = vcmask (!%p172_p10), 130048   ;;  %vm521_vm1 = vcmask (!%p172_p10), 261120   ;;  %vm538_vm2 = vcmask (!%p172_p10), 392192  }
   0xf   : > { %175 = sbr.rel (%p172_p10) target bundleno = 428 (0x1ac), region = 32  ;;  %s1084_s5 = smov (!%p172_p10), 16   ;;  %890 = vmatprep.subr.bf16.mxu0 (!%p172_p10), %v999_v60  ;;  %906 = vmatprep.subr.bf16.mxu1 (!%p172_p10), %v999_v60  ;;  %vm614_vm3 = vcmask (!%p172_p10), 523264  }
  0x10   : > { %891 = vmatpush3.bf16.msra.mxu0 (!%p172_p10), %v999_v60  ;;  %910 = vmatpush3.bf16.msra.mxu1 (!%p172_p10), %v999_v60  ;;  %s1085_s21 = smov (!%p172_p10), 48   ;;  %s199_s23 = sand.u32 (!%p172_p10), 1, %s1065_s13  }
  0x11   : > { %s1086_s9 = smov (!%p172_p10), [#allocation2]  }
  0x12   : > { %s1007_s10 = sshll.u32 (!%p172_p10), %s1086_s9, 4  ;;  %s1008_s10 = int_to_ptr.vmem [resolvable:$false] %s1007_s10 }
  0x13   : > { %s1009_s11 = scalar_lea.vmem (!%p172_p10), %s1008_s10, 2048 }
  0x16   : > { %s203_s26 = scalar_select %p202_p11, %s1073_s15, 1 }
  0x18   : > { %s914_s27 = smul.u32 72, %s203_s26  ;;  %s821_s26 = sshll.u32 %s199_s23, 6 }
  0x19   : > { %s201_s29 = scalar_lea.vmem [#allocation2], %s821_s26 }
  0x1a   : > { %s1169_s30 = scalar_lea.vmem %s1363_s0, %s914_s27 }
  0x1b   : > { %v1172_v0 = vld [vmem:[%s1169_s30 + $0x10] sm:$0xf]  ;;  %v1175_v1 = vld [vmem:[%s1169_s30 + $0x8] sm:$0xf]  ;;  %v1182_v4 = vld [vmem:[%s1169_s30 + $0x20] sm:$0xf] }
  0x1c   : > { %v848_v2 = vcombine.low %v1172_v0, %v1172_v0  ;;  %v847_v3 = vcombine.low %v1175_v1, %v1175_v1  ;;  %v227_v5 = vld [vmem:[%s1169_s30 + $0x24] sm:$0x1]  ;;  %v1187_v7 = vld [vmem:[%s1169_s30] sm:$0xf]  ;;  %v1191_v9 = vld [vmem:[%s1169_s30 + $0x28] sm:$0xf] }
  0x1d   : > { %v843_v6 = vcombine.low %v1182_v4, %v227_v5  ;;  %v223_v8 = vld [vmem:[%s1169_s30 + $0x4] sm:$0x1]  ;;  %v228_v11 = vld [vmem:[%s1169_s30 + $0x2c] sm:$0x1]  ;;  %v1198_v12 = vld [vmem:[%s1169_s30 + $0x8] sm:$0xf] }
  0x1e   : > { %386 = vrot.lane.b32.xlu1 %v848_v2, %s1083_s4  ;;  %384 = vrot.lane.b32.xlu0 %v847_v3, %s1083_s4  ;;  %v839_v10 = vcombine.low %v1187_v7, %v223_v8  ;;  %v224_v15 = vld [vmem:[%s1169_s30 + $0xc] sm:$0x1]  ;;  %v844_v18 = vcombine.low %v1191_v9, %v228_v11  ;;  %v1204_v20 = vld [vmem:[%s1169_s30 + $0x18] sm:$0xf] }
  0x1f   : > { %v317_v13 = vshrl.u32 %v843_v6, 16  ;;  %v319_v14 = vshll.u32 %v843_v6, 16  ;;  %v840_v19 = vcombine.low %v1198_v12, %v224_v15  ;;  %v226_v21 = vld [vmem:[%s1169_s30 + $0x1c] sm:$0x1]  ;;  %v1209_v24 = vld [vmem:[%s1169_s30 + $0x10] sm:$0xf] }
  0x20   : > { %v289_v16 = vshrl.u32 %v839_v10, 16  ;;  %v291_v17 = vshll.u32 %v839_v10, 16  ;;  %v842_v23 = vcombine.low %v1204_v20, %v226_v21  ;;  %v225_v25 = vld [vmem:[%s1169_s30 + $0x14] sm:$0x1]  ;;  %v324_v27 = vshrl.u32 %v844_v18, 16  ;;  %v1000_v6 = vld [vmem:[%s1364_s1 + $0x8] sm:$0xff]  }
  0x21   : > { %v321_v22 = vrot.slane %v319_v14, 1  ;;  %v326_v28 = vshll.u32 %v844_v18, 16  ;;  %v1213_v29 = vld [vmem:[%s1169_s30 + $0x38] sm:$0xf]  ;;  %v296_v31 = vshrl.u32 %v840_v19, 16  ;;  %v298_v32 = vshll.u32 %v840_v19, 16  ;;  %892 = vmatprep.subr.bf16.mxu0 %v1000_v6  ;;  %907 = vmatprep.subr.bf16.mxu1 %v1000_v6 }
  0x22   : > { %v293_v26 = vrot.slane %v291_v17, 1  ;;  %v312_v33 = vshll.u32 %v842_v23, 16  ;;  %v230_v34 = vld [vmem:[%s1169_s30 + $0x3c] sm:$0x1]  ;;  %v841_v37 = vcombine.low %v1209_v24, %v225_v25  ;;  %v1219_v39 = vld [vmem:[%s1169_s30 + $0x30] sm:$0xf]  ;;  %893 = vmatpush3.bf16.msra.mxu0 %v1000_v6  ;;  %911 = vmatpush3.bf16.msra.mxu1 %v1000_v6 }
  0x23   : > { %v322_v30 = vor.u32 %v321_v22, %v317_v13  ;;  %v328_v36 = vrot.slane %v326_v28, 1  ;;  %v846_v38 = vcombine.low %v1213_v29, %v230_v34  ;;  %v229_v40 = vld [vmem:[%s1169_s30 + $0x34] sm:$0x1]  ;;  %v300_v41 = vrot.slane %v298_v32, 1  ;;  %v828_v62 = vld [vmem:[%s1169_s30 + $0x30] sm:$0xf] }
  0x24   : > { %v294_v35 = vor.u32 %v293_v26, %v289_v16  ;;  %v310_v42 = vshrl.u32 %v842_v23, 16  ;;  %v314_v43 = vrot.slane %v312_v33, 1  ;;  %v845_v44 = vcombine.low %v1219_v39, %v229_v40  ;;  %v832_v58 = vld [vmem:[%s1169_s30 + $0x14] sm:$0x1]  ;;  %v831_v63 = vld [vmem:[%s1169_s30 + $0xc] sm:$0x1] }
  0x25   : > { %352 = vrot.lane.b32.xlu1 %v322_v30, %s1084_s5  ;;  %v329_v45 = vor.u32 %v328_v36, %v324_v27  ;;  %v303_v46 = vshrl.u32 %v841_v37, 16  ;;  %v305_v47 = vshll.u32 %v841_v37, 16  ;;  %v301_v48 = vor.u32 %v300_v41, %v296_v31  ;;  %v827_v2 = vld [vmem:[%s1169_s30 + $0x28] sm:$0xf]  ;;  %v836_v10 = vld [vmem:[%s1169_s30 + $0x34] sm:$0x1] }
  0x26   : > { %344 = vrot.lane.b32.xlu0 %v294_v35, %s1084_s5  ;;  %v340_v49 = vshll.u32 %v846_v38, 16  ;;  %v333_v51 = vshll.u32 %v845_v44, 16  ;;  %v315_v52 = vor.u32 %v314_v43, %v310_v42  ;;  %v338_v53 = vshrl.u32 %v846_v38, 16  ;;  %v826_v13 = vld [vmem:[%s1169_s30 + $0x20] sm:$0xf]  ;;  %v1001_v17 = vld [vmem:[%s1364_s1 + $0x10] sm:$0xff]  }
  0x27   : > { %v307_v50 = vrot.slane %v305_v47, 1  ;;  %v331_v56 = vshrl.u32 %v845_v44, 16  ;;  %v856_v3 = vcombine.low %v1172_v0, %v832_v58  ;;  %v852_v5 = vcombine.low %v828_v62, %v828_v62  ;;  %v835_v14 = vld [vmem:[%s1169_s30 + $0x2c] sm:$0x1]  ;;  %v825_v0 = vld [vmem:[%s1169_s30 + $0x18] sm:$0xf]  ;;  %894 = vmatprep.subr.bf16.mxu0 %v1001_v17  ;;  %908 = vmatprep.subr.bf16.mxu1 %v1001_v17 }
  0x28   : > { %v342_v54 = vrot.slane %v340_v49, 1  ;;  %v335_v57 = vrot.slane %v333_v51, 1  ;;  %v855_v8 = vcombine.low %v1175_v1, %v831_v63  ;;  %v851_v11 = vcombine.low %v827_v2, %v827_v2  ;;  %v834_v21 = vld [vmem:[%s1169_s30 + $0x24] sm:$0x1]  ;;  %v830_v23 = vld [vmem:[%s1169_s30 + $0x40] sm:$0xf]  ;;  %895 = vmatpush3.bf16.msra.mxu0 %v1001_v17  ;;  %912 = vmatpush3.bf16.msra.mxu1 %v1001_v17 }
  0x29   : > { %354 = vrot.lane.b32.xlu1 %v329_v45, %s1084_s5  ;;  %v308_v55 = vor.u32 %v307_v50, %v303_v46  ;;  %v434_v15 = vshll.u32 %v856_v3, 16  ;;  %v860_v16 = vcombine.low %v828_v62, %v836_v10  ;;  %v850_v1 = vcombine.low %v826_v13, %v826_v13  ;;  %v833_v25 = vld [vmem:[%s1169_s30 + $0x1c] sm:$0x1]  ;;  %v829_v26 = vld [vmem:[%s1169_s30 + $0x38] sm:$0xf] }
  0x2a   : > { %346 = vrot.lane.b32.xlu0 %v301_v48, %s1084_s5  ;;  %v343_v59 = vor.u32 %v342_v54, %v338_v53  ;;  %v336_v61 = vor.u32 %v335_v57, %v331_v56  ;;  %v427_v18 = vshll.u32 %v855_v8, 16  ;;  %v859_v19 = vcombine.low %v827_v2, %v835_v14  ;;  %v838_v32 = vld [vmem:[%s1169_s30 + $0x44] sm:$0x1]  ;;  %v1002_v35 = vld [vmem:[%s1364_s1 + $0x18] sm:$0xff]  }
  0x2b   : > { %v849_v22 = vcombine.low %v825_v0, %v825_v0  ;;  %v432_v27 = vshrl.u32 %v856_v3, 16  ;;  %v436_v28 = vrot.slane %v434_v15, 1  ;;  %v425_v30 = vshrl.u32 %v855_v8, 16  ;;  %v837_v37 = vld [vmem:[%s1169_s30 + $0x3c] sm:$0x1]  ;;  %896 = vmatprep.subr.bf16.mxu0 %v1002_v35  ;;  %909 = vmatprep.subr.bf16.mxu1 %v1002_v35  ;;  %s881_s30 = sshll.u32 %s1073_s15, 10 }
  0x2c   : > { %v858_v31 = vcombine.low %v826_v13, %v834_v21  ;;  %v854_v33 = vcombine.low %v830_v23, %v830_v23  ;;  %v462_v34 = vshll.u32 %v860_v16, 16  ;;  %v857_v36 = vcombine.low %v825_v0, %v833_v25  ;;  %897 = vmatpush3.bf16.msra.mxu0 %v1002_v35  ;;  %913 = vmatpush3.bf16.msra.mxu1 %v1002_v35  ;;  %s1311_s7 = scalar_lea.hbm %s1366_s3, %s881_s30  ;;  %s1317_s15 = scalar_lea.sflag [#allocation3], %s199_s23 }
  0x2d   : > { %350 = vrot.lane.b32.xlu1 %v315_v52, %s1084_s5  ;;  %v853_v38 = vcombine.low %v829_v26, %v829_v26  ;;  %v429_v40 = vrot.slane %v427_v18, 1  ;;  %v455_v41 = vshll.u32 %v859_v19, 16  ;;  %v862_v42 = vcombine.low %v830_v23, %v838_v32 }
  0x2e   : > { %348 = vrot.lane.b32.xlu0 %v308_v55, %s1084_s5  ;;  %v437_v43 = vor.u32 %v436_v28, %v432_v27  ;;  %v861_v44 = vcombine.low %v829_v26, %v837_v37  ;;  %v460_v45 = vshrl.u32 %v860_v16, 16  ;;  %v464_v46 = vrot.slane %v462_v34, 1 }
  0x2f   : > { %v448_v47 = vshll.u32 %v858_v31, 16  ;;  %v430_v48 = vor.u32 %v429_v40, %v425_v30  ;;  %v453_v49 = vshrl.u32 %v859_v19, 16  ;;  %v457_v50 = vrot.slane %v455_v41, 1 }
  0x30   : > { %v441_v51 = vshll.u32 %v857_v36, 16  ;;  %v465_v52 = vor.u32 %v464_v46, %v460_v45  ;;  %v446_v53 = vshrl.u32 %v858_v31, 16  ;;  %v476_v55 = vshll.u32 %v862_v42, 16 }
  0x31   : > { %358 = vrot.lane.b32.xlu1 %v343_v59, %s1084_s5  ;;  %v450_v54 = vrot.slane %v448_v47, 1  ;;  %v458_v56 = vor.u32 %v457_v50, %v453_v49  ;;  %v439_v57 = vshrl.u32 %v857_v36, 16  ;;  %v469_v59 = vshll.u32 %v861_v44, 16 }
  0x32   : > { %356 = vrot.lane.b32.xlu0 %v336_v61, %s1084_s5  ;;  %v443_v58 = vrot.slane %v441_v51, 1  ;;  %v474_v61 = vshrl.u32 %v862_v42, 16  ;;  %v478_v62 = vrot.slane %v476_v55, 1  ;;  %v467_v2 = vshrl.u32 %v861_v44, 16 }
  0x33   : > { %v451_v60 = vor.u32 %v450_v54, %v446_v53  ;;  %v471_v3 = vrot.slane %v469_v59, 1 }
  0x34   : > { %v444_v63 = vor.u32 %v443_v58, %v439_v57 }
  0x35   : > { %394 = vrot.lane.b32.xlu1 %v852_v5, %s1083_s4  ;;  %v479_v5 = vor.u32 %v478_v62, %v474_v61  ;;  %v472_v6 = vor.u32 %v471_v3, %v467_v2 }
  0x36   : > { %392 = vrot.lane.b32.xlu0 %v851_v11, %s1083_s4 }
  0x39   : > { %390 = vrot.lane.b32.xlu1 %v850_v1, %s1083_s4 }
  0x3a   : > { %388 = vrot.lane.b32.xlu0 %v849_v22, %s1083_s4 }
  0x3d   : > { %398 = vrot.lane.b32.xlu1 %v854_v33, %s1083_s4 }
  0x3e   : > { %396 = vrot.lane.b32.xlu0 %v853_v38, %s1083_s4  ;;  %s715_s4 = sshll.u32 %s201_s29, 4  ;;  %s1313_s4 = int_to_ptr.vmem [resolvable:$true] %s715_s4 }
  0x3f   : > { %s1003_s8 = scalar_lea.vmem %s1313_s4, 1024  ;;  %p1010_p1 = scmp.lt.s32.totalorder %s1313_s4, %s1008_s10 }
  0x40   : > { %p1004_p12 = scmp.ne.s32.totalorder %s1313_s4, %s1003_s8  ;;  %p1011_p2 = scmp.lt.s32.totalorder %s1009_s11, %s1003_s8 }
  0x41   : > { %482 = vrot.lane.b32.xlu1 %v437_v43, %s1085_s21 }
  0x42   : > { %480 = vrot.lane.b32.xlu0 %v430_v48, %s1085_s21  ;;  %p1005_p13 = pnand %p1004_p12, %p1149_p4  ;;  %p1012_p3 = por %p1011_p2, %p1010_p1 }
  0x44   : > { %p1006_p0 = pneg %p1005_p13 }
  0x45   : > { %490 = vrot.lane.b32.xlu1 %v465_v52, %s1085_s21 }
  0x46   : > { %488 = vrot.lane.b32.xlu0 %v458_v56, %s1085_s21  ;;  %p1013_p5 = pnand %p1012_p3, %p1006_p0 }
  0x49   : > { %486 = vrot.lane.b32.xlu1 %v451_v60, %s1085_s21 }
  0x4a   : > { %484 = vrot.lane.b32.xlu0 %v444_v63, %s1085_s21 }
  0x4d   : > { %494 = vrot.lane.b32.xlu1 %v479_v5, %s1085_s21 }
  0x4e   : > { %492 = vrot.lane.b32.xlu0 %v472_v6, %s1085_s21 }
  0x90   : > { %v387_v8 = vpop.permute.xlu1 %386  ;;  %v385_v10 = vpop.permute.xlu0 %384 }
  0x97   : > { %v353_v11 = vpop.permute.xlu1 %352 }
  0x98   : > { %v345_v13 = vpop.permute.xlu0 %344 }
  0x99   : > { %v499_v27 = vsel %vm496_vm0, %v1187_v7, %v345_v13  ;;  %v511_v7 = vsel %vm496_vm0, %v1182_v4, %v353_v11 }
  0x9a   : > { %v523_v32 = vsel %vm521_vm1, %v499_v27, %v385_v10 }
  0x9b   : > { %v355_v14 = vpop.permute.xlu1 %354 }
  0x9c   : > { %v347_v0 = vpop.permute.xlu0 %346 }
  0x9d   : > { %v502_v25 = vsel %vm496_vm0, %v1198_v12, %v347_v0  ;;  %v514_v12 = vsel %vm496_vm0, %v1191_v9, %v355_v14 }
  0x9e   : > { %v525_v30 = vsel %vm521_vm1, %v502_v25, %v387_v8 }
  0x9f   : > { %v351_v15 = vpop.permute.xlu1 %350 }
  0xa0   : > { %v349_v16 = vpop.permute.xlu0 %348  ;;  %v508_v43 = vsel %vm496_vm0, %v1204_v20, %v351_v15 }
  0xa1   : > { %v505_v44 = vsel %vm496_vm0, %v1209_v24, %v349_v16 }
  0xa3   : > { %v359_v1 = vpop.permute.xlu1 %358 }
  0xa4   : > { %v357_v17 = vpop.permute.xlu0 %356  ;;  %v520_v20 = vsel %vm496_vm0, %v1213_v29, %v359_v1  ;;  %v863_v29 = vld [vmem:[%s1365_s2] ss:$0 sm:$0xff] }
  0xa5   : > { %v517_v24 = vsel %vm496_vm0, %v1219_v39, %v357_v17 }
  0xa7   : > { %v395_v18 = vpop.permute.xlu1 %394 }
  0xa8   : > { %v393_v19 = vpop.permute.xlu0 %392  ;;  %v533_v36 = vsel %vm521_vm1, %v514_v12, %v395_v18 }
  0xa9   : > { %v531_v38 = vsel %vm521_vm1, %v511_v7, %v393_v19 }
  0xab   : > { %v391_v21 = vpop.permute.xlu1 %390 }
  0xac   : > { %v389_v22 = vpop.permute.xlu0 %388  ;;  %v529_v4 = vsel %vm521_vm1, %v508_v43, %v391_v21 }
  0xad   : > { %v527_v46 = vsel %vm521_vm1, %v505_v44, %v389_v22 }
  0xaf   : > { %v399_v23 = vpop.permute.xlu1 %398 }
  0xb0   : > { %v397_v26 = vpop.permute.xlu0 %396  ;;  %v537_v51 = vsel %vm521_vm1, %v520_v20, %v399_v23 }
  0xb1   : > { %v535_v53 = vsel %vm521_vm1, %v517_v24, %v397_v26 }
  0xb3   : > { %v483_v28 = vpop.permute.xlu1 %482 }
  0xb4   : > { %v542_v31 = vsel %vm538_vm2, %v525_v30, %v483_v28  ;;  %v481_v33 = vpop.permute.xlu0 %480 }
  0xb5   : > { %v540_v34 = vsel %vm538_vm2, %v523_v32, %v481_v33 }
  0xb6   : > { %v864_v35 = vcombine.low %v540_v34, %v542_v31 }
  0xb7   : > { %v491_v37 = vpop.permute.xlu1 %490 }
  0xb8   : > { %v550_v40 = vsel %vm538_vm2, %v533_v36, %v491_v37  ;;  %898 = vmatprep.mubr.msk.bf16.mxu0 %vm614_vm3, %v864_v35  ;;  %v489_v41 = vpop.permute.xlu0 %488 }
  0xb9   : > { %v548_v42 = vsel %vm538_vm2, %v531_v38, %v489_v41 }
  0xba   : > { %v866_v9 = vcombine.low %v548_v42, %v550_v40 }
  0xbb   : > { %v487_v45 = vpop.permute.xlu1 %486 }
  0xbc   : > { %v546_v47 = vsel %vm538_vm2, %v529_v4, %v487_v45  ;;  %902 = vmatprep.mubr.msk.bf16.mxu1 %vm614_vm3, %v866_v9  ;;  %v485_v48 = vpop.permute.xlu0 %484 }
  0xbd   : > { %v544_v49 = vsel %vm538_vm2, %v527_v46, %v485_v48 }
  0xbe   : > { %v865_v50 = vcombine.low %v544_v49, %v546_v47 }
  0xbf   : > { %v495_v52 = vpop.permute.xlu1 %494 }
  0xc0   : > { %v554_v54 = vsel %vm538_vm2, %v537_v51, %v495_v52  ;;  %899 = vmatmul.mubr.msk.bf16.vlgmr.msra.gmra.mrb[0].mxu0 %vm614_vm3, %v865_v50  ;;  %v493_v55 = vpop.permute.xlu0 %492 }
  0xc1   : > { %v552_v56 = vsel %vm538_vm2, %v535_v53, %v493_v55 }
  0xc2   : > { %v867_v57 = vcombine.low %v552_v56, %v554_v54 }
  0xc4   : > { %903 = vmatmul.mubr.msk.bf16.vlgmr.msra.gmra.mrb[0].mxu1 %vm614_vm3, %v867_v57 }
 0x193   : > { %v900_v39 = vpop.f32.mrb[0].mxu0 }
 0x194   : > { %v670_v58 = vadd.f32 %v900_v39, %v863_v29  ;;  %v661_v59 = vpop.f32.mrb[1].mxu0 }
 0x195   : > { %v662_v60 = vadd.f32 %v863_v29, %v661_v59  ;;  %v901_v61 = vpop.f32.mrb[2].mxu0 }
 0x196   : > { %694 = vst [vmem:[%s201_s29 + $0x10] sm:$0xff] %v670_v58  ;;  %v673_v62 = vadd.f32 %v901_v61, %v863_v29  ;;  %v664_v63 = vpop.f32.mrb[3].mxu0 }
 0x197   : > { %692 = vst [vmem:[%s201_s29] sm:$0xff] %v662_v60  ;;  %v665_v2 = vadd.f32 %v863_v29, %v664_v63  ;;  %v904_v3 = vpop.f32.mrb[0].mxu1 }
 0x198   : > { %695 = vst [vmem:[%s201_s29 + $0x18] sm:$0xff] %v673_v62  ;;  %v686_v5 = vadd.f32 %v904_v3, %v863_v29  ;;  %v677_v6 = vpop.f32.mrb[1].mxu1 }
 0x199   : > { %693 = vst [vmem:[%s201_s29 + $0x8] sm:$0xff] %v665_v2  ;;  %v678_v8 = vadd.f32 %v863_v29, %v677_v6  ;;  %v905_v10 = vpop.f32.mrb[2].mxu1 }
 0x19a   : > { %698 = vst [vmem:[%s201_s29 + $0x30] sm:$0xff] %v686_v5  ;;  %v689_v11 = vadd.f32 %v905_v10, %v863_v29  ;;  %v680_v13 = vpop.f32.mrb[3].mxu1 }
 0x19b   : > { %696 = vst [vmem:[%s201_s29 + $0x20] sm:$0xff] %v678_v8  ;;  %v681_v14 = vadd.f32 %v863_v29, %v680_v13 }
 0x19c   : > { %699 = vst [vmem:[%s201_s29 + $0x38] sm:$0xff] %v689_v11 }
 0x19d   : > { %697 = vst [vmem:[%s201_s29 + $0x28] sm:$0xff] %v681_v14 }
 0x19e   : > { %1016 = shalt.err (!%p1013_p5)
}
 0x19f   : > { %s1017_s18 = scalar_lea.hbm %s1311_s7, 1024  ;;  %s1021_s23 = scalar_lea.hbm %s1366_s3, 2048 }
 0x1a0   : > { %p1018_p6 = scmp.ne.s32.totalorder %s1311_s7, %s1017_s18  ;;  %p1022_p10 = scmp.lt.u32.totalorder %s1311_s7, %s1366_s3 }
 0x1a1   : > { %p1023_p11 = scmp.lt.u32.totalorder %s1021_s23, %s1017_s18  ;;  %p1025_p13 = scmp.lt.u32.totalorder %s1017_s18, %s1311_s7 }
 0x1a2   : > { %p1019_p7 = pnand %p1018_p6, %p1149_p4 }
 0x1a3   : > { %p1024_p12 = por %p1023_p11, %p1022_p10 }
 0x1a4   : > { %p1020_p9 = pneg %p1019_p7 }
 0x1a5   : > { %p1026_p0 = por %p1025_p13, %p1024_p12 }
 0x1a7   : > { %p1027_p1 = pnand %p1026_p0, %p1020_p9 }
 0x1a9   : > { %1030 = shalt.err (!%p1027_p1)
}
 0x1aa   : > { %s1087_s28 = smov 128   ;;  %s1088_s29 = smov 8  }
 0x1ab   : > { %915 = dma.vmem_to_hbm [thread:$0]  (%p1149_p4), %s1313_s4, 1024, %s1311_s7, %s1317_s15, %s1087_s28, %s1087_s28, %s1088_s29  }
 0x1ac PF: > { %p921_p2 = scmp.ge.s32.totalorder %s1081_s17, 2  ;;  %s730_s30 = sand.u32 1, %s1061_s12  }
 0x1ad   : > { %s731_s5 = scalar_lea.sflag [#allocation3], %s730_s30 }
 0x1ae   : > { %p918_p3 = pnand %p921_p2, %p1156_p8 }
 0x1b0   : > { %1056 = dma.done.wait (!%p918_p3), %s731_s5, 1024  }
 0x1b1   : > { %1058 = vsyncadd (!%p918_p3), %s731_s5, 4294966272  ;;  %s16_s17 = sadd.s32 1, %s1081_s17   ;;  %s1369_s12 = smov %s1065_s13 }
 0x1b2   : > { %p13_p5 = scmp.ge.s32.totalorder %s16_s17, 4   ;;  %s1370_s13 = smov %s1069_s14 }
 0x1b3   : > { %s1371_s14 = smov %s1162_s25  ;;  %s1372_s15 = smov %s1077_s16 }
 0x1b4   : > { %s1373_s16 = smov %s1375_s20  ;;  %15 = sbr.rel (!%p13_p5) target bundleno = 4 (0x4), region = 74 }
 0x1bb   :  { %736 = vsyncpa [#allocation3], 1 }
 0x1bc   :  { %738 = vsyncpa [#allocation3 + $0x1], 1 }

</bundles_post_ra>
